<compile_context>
chip_gen: v7x
topology: tpu7x:2x2x1
jax: 0.10.0
libtpu: 0.0.40
codegen_flags: <defaults>
</compile_context>

<pallas_src>
import jax
import jax.numpy as jnp
from jax.experimental import pallas as pl
from jax.experimental.pallas import tpu as pltpu

LATENT_D = 12
OUT_PAD = 128            # lane-dense output width (>= LATENT_D, multiple of 128)
EPS = 1e-5


# ----------------------------- Pallas kernel ------------------------------ #
def cnn_kernel(x_ref, w1_ref, b1_ref, w2_ref, b2_ref, w3_ref, b3_ref,
               w4_ref, b4_ref, w5_ref, b5_ref, o_ref):
    # Conv1d(1,32,k=2) + BN + ReLU, with the conv2 receptive-field gather fused
    # into the weight: lanes = [pos0(32) | pos1(32) | pos1(32) | pos2(32)].
    h1 = jnp.maximum(
        jnp.dot(x_ref[...], w1_ref[...], preferred_element_type=jnp.float32)
        + b1_ref[...], 0.0)                              # (TB, 128)

    # Conv1d(32,64,k=2) + BN + ReLU  (block-diagonal weight: both output positions in one dot)
    h2 = jnp.maximum(
        jnp.dot(h1, w2_ref[...], preferred_element_type=jnp.float32)
        + b2_ref[...], 0.0)                              # (TB, 128) = [pos0(64) | pos1(64)]

    # Conv1d(64,128,k=1) + BN + ReLU (block-diagonal; columns already in flatten order c*2+l)
    h3 = jnp.maximum(
        jnp.dot(h2, w3_ref[...], preferred_element_type=jnp.float32)
        + b3_ref[...], 0.0)                              # (TB, 256)

    # Flatten + Linear(256,64) + ReLU
    h4 = jnp.maximum(
        jnp.dot(h3, w4_ref[...], preferred_element_type=jnp.float32)
        + b4_ref[...], 0.0)                              # (TB, 64)

    # Linear(64,12) + ReLU, zero-padded to 128 lanes for an unmasked lane-dense store.
    o_ref[...] = jnp.maximum(
        jnp.dot(h4, w5_ref[...], preferred_element_type=jnp.float32)
        + b5_ref[...], 0.0)                              # (TB, 128)


# ------------------------------ JAX glue ----------------------------------- #
def _bn_scale_shift(bn_params):
    gamma, beta, mean, var = bn_params
    s = gamma / jnp.sqrt(var + EPS)
    sh = beta - mean * s
    return s, sh


def prep_weight_args(p):
    # ---- Conv1 (32,1,2): fold BN, then build (4,128) weight that directly emits
    # h1_cat lanes [pos0 | pos1 | pos1 | pos2] (each 32 channels).
    s1, sh1 = _bn_scale_shift(p['bn1'])
    w1f = jnp.transpose(p['w1'][:, 0, :]) * s1[None, :]            # (2, 32), rows = kernel tap
    b1f = p['b1'] * s1 + sh1                                        # (32,)
    W1 = jnp.zeros((4, 128), jnp.float32)
    W1 = W1.at[0, 0:32].set(w1f[0]).at[1, 0:32].set(w1f[1])         # position 0
    W1 = W1.at[1, 32:64].set(w1f[0]).at[2, 32:64].set(w1f[1])       # position 1
    W1 = W1.at[1, 64:96].set(w1f[0]).at[2, 64:96].set(w1f[1])       # position 1 (dup)
    W1 = W1.at[2, 96:128].set(w1f[0]).at[3, 96:128].set(w1f[1])     # position 2
    B1 = jnp.tile(b1f, 4)[None, :]                                  # (1, 128)

    # ---- Conv2 (64,32,2): receptive-field-stacked (64,64) block, BN-folded, block-diag (128,128).
    s2, sh2 = _bn_scale_shift(p['bn2'])
    w2s = jnp.concatenate([jnp.transpose(p['w2'][:, :, 0]),
                           jnp.transpose(p['w2'][:, :, 1])], axis=0) * s2[None, :]   # (64, 64)
    b2f = p['b2'] * s2 + sh2
    W2 = jnp.zeros((128, 128), jnp.float32)
    W2 = W2.at[0:64, 0:64].set(w2s).at[64:128, 64:128].set(w2s)
    B2 = jnp.tile(b2f, 2)[None, :]                                  # (1, 128)

    # ---- Conv3 (128,64,1): BN-folded, block-diag (128,256) with columns in flatten order c*2+l.
    s3, sh3 = _bn_scale_shift(p['bn3'])
    w3f = jnp.transpose(p['w3'][:, :, 0]) * s3[None, :]             # (64, 128)
    b3f = p['b3'] * s3 + sh3                                         # (128,)
    W3 = jnp.zeros((128, 256), jnp.float32)
    W3 = W3.at[0:64, 0::2].set(w3f)                                  # position 0 -> even cols
    W3 = W3.at[64:128, 1::2].set(w3f)                                # position 1 -> odd cols
    B3 = jnp.repeat(b3f, 2)[None, :]                                 # (1, 256)

    # ---- Linear(256,64): h3 columns already match PyTorch flatten order, plain transpose.
    W4 = jnp.transpose(p['w4'])                                      # (256, 64)
    B4 = p['b4'][None, :]                                            # (1, 64)

    # ---- Linear(64,12): zero-pad to 128 output lanes for lane-dense stores.
    W5 = jnp.zeros((64, OUT_PAD), jnp.float32).at[:, :LATENT_D].set(jnp.transpose(p['w5']))
    B5 = jnp.zeros((1, OUT_PAD), jnp.float32).at[:, :LATENT_D].set(p['b5'][None, :])

    return (W1, B1, W2, B2, W3, B3, W4, B4, W5, B5)


def _round_up(n, m):
    return ((n + m - 1) // m) * m


def _choose_tile_b(B, tile_b):
    if B <= 8:
        return 8
    # Aim for >= 2 grid steps (v7x has 2 TCs; also enables real DMA double-buffering),
    # capped at tile_b (small tiles cost ~0.35us/step, negligible here).
    return max(8, min(tile_b, _round_up((B + 1) // 2, 8)))


def cnn_feature_extractor(x, params, tile_b=256):
    B = x.shape[0]
    TB = _choose_tile_b(B, tile_b)
    B_pad = _round_up(B, TB)

    x2 = x[:, 0, :]                            # (B, 4), Cin == 1
    if B_pad != B:
        x2 = jnp.pad(x2, ((0, B_pad - B), (0, 0)))

    w_args = prep_weight_args(params)

    def const_spec(arr):
        nd = arr.ndim
        return pl.BlockSpec(arr.shape, lambda i, _n=nd: (0,) * _n)

    in_specs = ([pl.BlockSpec((TB, 4), lambda i: (i, 0))]
                + [const_spec(a) for a in w_args])
    out_specs = pl.BlockSpec((TB, OUT_PAD), lambda i: (i, 0))

    flops_per_row = 2 * (4 * 128 + 128 * 128 + 128 * 256 + 256 * 64 + 64 * OUT_PAD)
    weight_bytes = sum(int(a.size) * a.dtype.itemsize for a in w_args)
    cost = pl.CostEstimate(
        flops=flops_per_row * B_pad,
        transcendentals=0,
        bytes_accessed=4 * B_pad * (4 + OUT_PAD) + weight_bytes)

    out = pl.pallas_call(
        cnn_kernel,
        out_shape=jax.ShapeDtypeStruct((B_pad, OUT_PAD), jnp.float32),
        grid_spec=pltpu.PrefetchScalarGridSpec(
            num_scalar_prefetch=0,
            grid=(B_pad // TB,),
            in_specs=in_specs,
            out_specs=out_specs),
        compiler_params=pltpu.CompilerParams(
            dimension_semantics=("parallel",)),
        cost_estimate=cost,
    )(x2, *w_args)
    return out[:B, :LATENT_D]


# --------------------------- Parameter init -------------------------------- #
def init_params(key):
    ks = iter(jax.random.split(key, 32))

    def nrm(shape, scale=0.3):
        return scale * jax.random.normal(next(ks), shape, jnp.float32)

    def bn(c):
        gamma = 1.0 + 0.1 * jax.random.normal(next(ks), (c,), jnp.float32)
        beta = 0.1 * jax.random.normal(next(ks), (c,), jnp.float32)
        mean = 0.1 * jax.random.normal(next(ks), (c,), jnp.float32)
        var = 0.5 + 0.5 * jnp.abs(jax.random.normal(next(ks), (c,), jnp.float32))
        return (gamma, beta, mean, var)

    p = {}
    p['w1'] = nrm((32, 1, 2));        p['b1'] = nrm((32,), 0.1);  p['bn1'] = bn(32)
    p['w2'] = nrm((64, 32, 2), 0.15); p['b2'] = nrm((64,), 0.1);  p['bn2'] = bn(64)
    p['w3'] = nrm((128, 64, 1), 0.1); p['b3'] = nrm((128,), 0.1); p['bn3'] = bn(128)
    p['w4'] = nrm((64, 256), 0.08);   p['b4'] = nrm((64,), 0.1)
    p['w5'] = nrm((LATENT_D, 64), 0.1); p['b5'] = nrm((LATENT_D,), 0.1)
    return p


# ------------------------- Pure-JAX reference ------------------------------ #
def _conv1d_ref(x, w, b):
    # x: (B, Cin, L), w: (Cout, Cin, K)  ->  (B, Cout, L-K+1)
    K = w.shape[2]
    Lout = x.shape[2] - K + 1
    cols = [jnp.einsum('bck,ock->bo', x[:, :, l:l + K], w) + b for l in range(Lout)]
    return jnp.stack(cols, axis=-1)


def _bn_ref(x, bn_params):
    g, be, m, v = bn_params
    return ((x - m[None, :, None]) / jnp.sqrt(v[None, :, None] + EPS)
            * g[None, :, None] + be[None, :, None])


def reference(x, p):
    h = jax.nn.relu(_bn_ref(_conv1d_ref(x, p['w1'], p['b1']), p['bn1']))
    h = jax.nn.relu(_bn_ref(_conv1d_ref(h, p['w2'], p['b2']), p['bn2']))
    h = jax.nn.relu(_bn_ref(_conv1d_ref(h, p['w3'], p['b3']), p['bn3']))
    h = h.reshape(h.shape[0], -1)                    # nn.Flatten: (B, 128*2), j = c*2 + l
    h = jax.nn.relu(h @ p['w4'].T + p['b4'])
    return jax.nn.relu(h @ p['w5'].T + p['b5'])


# --------------------------------- main ------------------------------------ #
if __name__ == "__main__":
    key = jax.random.PRNGKey(0)
    pkey, xkey = jax.random.split(key)
    params = init_params(pkey)

    # Linear(256, 64) after Flatten forces Conv3 output length 2 => input L = 4.
    x = jax.random.normal(xkey, (2, 1, 4), jnp.float32)   # (B, Cin=1, L=4)

    out = cnn_feature_extractor(x, params)
    out = jax.block_until_ready(out)

    ref = reference(x, params)
    assert out.shape == (2, LATENT_D)
    assert jnp.allclose(out, ref, atol=1e-4, rtol=1e-4), (out, ref)
    print("KERNEL_OK")
</pallas_src>

<mosaic_0001>
module attributes {stable_mosaic.version = 11 : i64} {
  func.func @cnn_kernel(%arg0: i32, %arg1: memref<8x4xf32, #tpu.memory_space<vmem>>, %arg2: memref<4x128xf32, #tpu.memory_space<vmem>>, %arg3: memref<1x128xf32, #tpu.memory_space<vmem>>, %arg4: memref<128x128xf32, #tpu.memory_space<vmem>>, %arg5: memref<1x128xf32, #tpu.memory_space<vmem>>, %arg6: memref<128x256xf32, #tpu.memory_space<vmem>>, %arg7: memref<1x256xf32, #tpu.memory_space<vmem>>, %arg8: memref<256x64xf32, #tpu.memory_space<vmem>>, %arg9: memref<1x64xf32, #tpu.memory_space<vmem>>, %arg10: memref<64x128xf32, #tpu.memory_space<vmem>>, %arg11: memref<1x128xf32, #tpu.memory_space<vmem>>, %arg12: memref<8x128xf32, #tpu.memory_space<vmem>>) attributes {dimension_semantics = [#tpu.dimension_semantics<parallel>], iteration_bounds = array<i64: 1>, scalar_prefetch = 0 : i64, scratch_operands = 0 : i64, tpu.core_type = #tpu.core_type<tc>, window_params = [{transform_indices = @transform_0, window_bounds = array<i64: 8, 4>}, {pipeline_mode = #tpu.pipeline_mode<synchronous>, transform_indices = @transform_1, window_bounds = array<i64: 4, 128>}, {pipeline_mode = #tpu.pipeline_mode<synchronous>, transform_indices = @transform_2, window_bounds = array<i64: 1, 128>}, {pipeline_mode = #tpu.pipeline_mode<synchronous>, transform_indices = @transform_3, window_bounds = array<i64: 128, 128>}, {pipeline_mode = #tpu.pipeline_mode<synchronous>, transform_indices = @transform_4, window_bounds = array<i64: 1, 128>}, {pipeline_mode = #tpu.pipeline_mode<synchronous>, transform_indices = @transform_5, window_bounds = array<i64: 128, 256>}, {pipeline_mode = #tpu.pipeline_mode<synchronous>, transform_indices = @transform_6, window_bounds = array<i64: 1, 256>}, {pipeline_mode = #tpu.pipeline_mode<synchronous>, transform_indices = @transform_7, window_bounds = array<i64: 256, 64>}, {pipeline_mode = #tpu.pipeline_mode<synchronous>, transform_indices = @transform_8, window_bounds = array<i64: 1, 64>}, {pipeline_mode = #tpu.pipeline_mode<synchronous>, transform_indices = @transform_9, window_bounds = array<i64: 64, 128>}, {pipeline_mode = #tpu.pipeline_mode<synchronous>, transform_indices = @transform_10, window_bounds = array<i64: 1, 128>}, {transform_indices = @transform_11, window_bounds = array<i64: 8, 128>}]} {
    %c0 = arith.constant 0 : index
    %c0_0 = arith.constant 0 : index
    %0 = vector.load %arg1[%c0, %c0_0] : memref<8x4xf32, #tpu.memory_space<vmem>>, vector<8x4xf32>
    %c0_1 = arith.constant 0 : index
    %c0_2 = arith.constant 0 : index
    %1 = vector.load %arg2[%c0_1, %c0_2] : memref<4x128xf32, #tpu.memory_space<vmem>>, vector<4x128xf32>
    %cst = arith.constant dense<0.000000e+00> : vector<8x128xf32>
    %2 = tpu.matmul %0, %1, %cst {dimension_numbers = #tpu.dot_dimension_numbers<[1], [0], [0], [1], [0, 0, 1, 1], [], []>} : vector<8x4xf32>, vector<4x128xf32>, vector<8x128xf32> -> vector<8x128xf32>
    %c0_3 = arith.constant 0 : index
    %c0_4 = arith.constant 0 : index
    %3 = vector.load %arg3[%c0_3, %c0_4] : memref<1x128xf32, #tpu.memory_space<vmem>>, vector<1x128xf32>
    %4 = vector.broadcast %3 : vector<1x128xf32> to vector<8x128xf32>
    %5 = arith.addf %2, %4 : vector<8x128xf32>
    %cst_5 = arith.constant 0.000000e+00 : f32
    %6 = vector.broadcast %cst_5 : f32 to vector<8x128xf32>
    %7 = arith.maximumf %5, %6 : vector<8x128xf32>
    %c0_6 = arith.constant 0 : index
    %c0_7 = arith.constant 0 : index
    %8 = vector.load %arg4[%c0_6, %c0_7] : memref<128x128xf32, #tpu.memory_space<vmem>>, vector<128x128xf32>
    %cst_8 = arith.constant dense<0.000000e+00> : vector<8x128xf32>
    %9 = tpu.matmul %7, %8, %cst_8 {dimension_numbers = #tpu.dot_dimension_numbers<[1], [0], [0], [1], [0, 0, 1, 1], [], []>} : vector<8x128xf32>, vector<128x128xf32>, vector<8x128xf32> -> vector<8x128xf32>
    %c0_9 = arith.constant 0 : index
    %c0_10 = arith.constant 0 : index
    %10 = vector.load %arg5[%c0_9, %c0_10] : memref<1x128xf32, #tpu.memory_space<vmem>>, vector<1x128xf32>
    %11 = vector.broadcast %10 : vector<1x128xf32> to vector<8x128xf32>
    %12 = arith.addf %9, %11 : vector<8x128xf32>
    %cst_11 = arith.constant 0.000000e+00 : f32
    %13 = vector.broadcast %cst_11 : f32 to vector<8x128xf32>
    %14 = arith.maximumf %12, %13 : vector<8x128xf32>
    %c0_12 = arith.constant 0 : index
    %c0_13 = arith.constant 0 : index
    %15 = vector.load %arg6[%c0_12, %c0_13] : memref<128x256xf32, #tpu.memory_space<vmem>>, vector<128x256xf32>
    %cst_14 = arith.constant dense<0.000000e+00> : vector<8x256xf32>
    %16 = tpu.matmul %14, %15, %cst_14 {dimension_numbers = #tpu.dot_dimension_numbers<[1], [0], [0], [1], [0, 0, 1, 1], [], []>} : vector<8x128xf32>, vector<128x256xf32>, vector<8x256xf32> -> vector<8x256xf32>
    %c0_15 = arith.constant 0 : index
    %c0_16 = arith.constant 0 : index
    %17 = vector.load %arg7[%c0_15, %c0_16] : memref<1x256xf32, #tpu.memory_space<vmem>>, vector<1x256xf32>
    %18 = vector.broadcast %17 : vector<1x256xf32> to vector<8x256xf32>
    %19 = arith.addf %16, %18 : vector<8x256xf32>
    %cst_17 = arith.constant 0.000000e+00 : f32
    %20 = vector.broadcast %cst_17 : f32 to vector<8x256xf32>
    %21 = arith.maximumf %19, %20 : vector<8x256xf32>
    %c0_18 = arith.constant 0 : index
    %c0_19 = arith.constant 0 : index
    %22 = vector.load %arg8[%c0_18, %c0_19] : memref<256x64xf32, #tpu.memory_space<vmem>>, vector<256x64xf32>
    %cst_20 = arith.constant dense<0.000000e+00> : vector<8x64xf32>
    %23 = tpu.matmul %21, %22, %cst_20 {dimension_numbers = #tpu.dot_dimension_numbers<[1], [0], [0], [1], [0, 0, 1, 1], [], []>} : vector<8x256xf32>, vector<256x64xf32>, vector<8x64xf32> -> vector<8x64xf32>
    %c0_21 = arith.constant 0 : index
    %c0_22 = arith.constant 0 : index
    %24 = vector.load %arg9[%c0_21, %c0_22] : memref<1x64xf32, #tpu.memory_space<vmem>>, vector<1x64xf32>
    %25 = vector.broadcast %24 : vector<1x64xf32> to vector<8x64xf32>
    %26 = arith.addf %23, %25 : vector<8x64xf32>
    %cst_23 = arith.constant 0.000000e+00 : f32
    %27 = vector.broadcast %cst_23 : f32 to vector<8x64xf32>
    %28 = arith.maximumf %26, %27 : vector<8x64xf32>
    %c0_24 = arith.constant 0 : index
    %c0_25 = arith.constant 0 : index
    %29 = vector.load %arg10[%c0_24, %c0_25] : memref<64x128xf32, #tpu.memory_space<vmem>>, vector<64x128xf32>
    %cst_26 = arith.constant dense<0.000000e+00> : vector<8x128xf32>
    %30 = tpu.matmul %28, %29, %cst_26 {dimension_numbers = #tpu.dot_dimension_numbers<[1], [0], [0], [1], [0, 0, 1, 1], [], []>} : vector<8x64xf32>, vector<64x128xf32>, vector<8x128xf32> -> vector<8x128xf32>
    %c0_27 = arith.constant 0 : index
    %c0_28 = arith.constant 0 : index
    %31 = vector.load %arg11[%c0_27, %c0_28] : memref<1x128xf32, #tpu.memory_space<vmem>>, vector<1x128xf32>
    %32 = vector.broadcast %31 : vector<1x128xf32> to vector<8x128xf32>
    %33 = arith.addf %30, %32 : vector<8x128xf32>
    %cst_29 = arith.constant 0.000000e+00 : f32
    %34 = vector.broadcast %cst_29 : f32 to vector<8x128xf32>
    %35 = arith.maximumf %33, %34 : vector<8x128xf32>
    %c0_30 = arith.constant 0 : index
    %c0_31 = arith.constant 0 : index
    %36 = vector.load %arg12[%c0_30, %c0_31] : memref<8x128xf32, #tpu.memory_space<vmem>>, vector<8x128xf32>
    tpu.vector_store %arg12[%c0_30, %c0_31], %35 {strides = array<i32>} : memref<8x128xf32, #tpu.memory_space<vmem>>, vector<8x128xf32>,
    return
  }
  func.func @transform_0(%arg0: i32) -> (i32, i32) {
    %c0_i32 = arith.constant 0 : i32
    %c0_i32_0 = arith.constant 0 : i32
    return %arg0, %c0_i32 : i32, i32
  }
  func.func @transform_1(%arg0: i32) -> (i32, i32) {
    %c0_i32 = arith.constant 0 : i32
    %c0_i32_0 = arith.constant 0 : i32
    %c0_i32_1 = arith.constant 0 : i32
    return %c0_i32, %c0_i32_0 : i32, i32
  }
  func.func @transform_2(%arg0: i32) -> (i32, i32) {
    %c0_i32 = arith.constant 0 : i32
    %c0_i32_0 = arith.constant 0 : i32
    %c0_i32_1 = arith.constant 0 : i32
    return %c0_i32, %c0_i32_0 : i32, i32
  }
  func.func @transform_3(%arg0: i32) -> (i32, i32) {
    %c0_i32 = arith.constant 0 : i32
    %c0_i32_0 = arith.constant 0 : i32
    %c0_i32_1 = arith.constant 0 : i32
    return %c0_i32, %c0_i32_0 : i32, i32
  }
  func.func @transform_4(%arg0: i32) -> (i32, i32) {
    %c0_i32 = arith.constant 0 : i32
    %c0_i32_0 = arith.constant 0 : i32
    %c0_i32_1 = arith.constant 0 : i32
    return %c0_i32, %c0_i32_0 : i32, i32
  }
  func.func @transform_5(%arg0: i32) -> (i32, i32) {
    %c0_i32 = arith.constant 0 : i32
    %c0_i32_0 = arith.constant 0 : i32
    %c0_i32_1 = arith.constant 0 : i32
    return %c0_i32, %c0_i32_0 : i32, i32
  }
  func.func @transform_6(%arg0: i32) -> (i32, i32) {
    %c0_i32 = arith.constant 0 : i32
    %c0_i32_0 = arith.constant 0 : i32
    %c0_i32_1 = arith.constant 0 : i32
    return %c0_i32, %c0_i32_0 : i32, i32
  }
  func.func @transform_7(%arg0: i32) -> (i32, i32) {
    %c0_i32 = arith.constant 0 : i32
    %c0_i32_0 = arith.constant 0 : i32
    %c0_i32_1 = arith.constant 0 : i32
    return %c0_i32, %c0_i32_0 : i32, i32
  }
  func.func @transform_8(%arg0: i32) -> (i32, i32) {
    %c0_i32 = arith.constant 0 : i32
    %c0_i32_0 = arith.constant 0 : i32
    %c0_i32_1 = arith.constant 0 : i32
    return %c0_i32, %c0_i32_0 : i32, i32
  }
  func.func @transform_9(%arg0: i32) -> (i32, i32) {
    %c0_i32 = arith.constant 0 : i32
    %c0_i32_0 = arith.constant 0 : i32
    %c0_i32_1 = arith.constant 0 : i32
    return %c0_i32, %c0_i32_0 : i32, i32
  }
  func.func @transform_10(%arg0: i32) -> (i32, i32) {
    %c0_i32 = arith.constant 0 : i32
    %c0_i32_0 = arith.constant 0 : i32
    %c0_i32_1 = arith.constant 0 : i32
    return %c0_i32, %c0_i32_0 : i32, i32
  }
  func.func @transform_11(%arg0: i32) -> (i32, i32) {
    %c0_i32 = arith.constant 0 : i32
    %c0_i32_0 = arith.constant 0 : i32
    return %arg0, %c0_i32 : i32, i32
  }
}

</mosaic_0001>

<bundles_post_ra>
// kernel: tpu_custom_call.1
= control target key start
LH: loop header
LB: loop body
LE: loop exit
PB: predicated region body
PF: predicated region fallthrough
CT: control target
= control target key end

     0   :  { %16 = vsyncpa [#allocation3], 0  ;;  %s1224_s0 = inlined_call_operand.vmem [shape: f32[8,4], index: 0, kind: input, shape index: {}]   ;;  %s1225_s1 = inlined_call_operand.vmem [shape: f32[4,128], index: 1, kind: input, shape index: {}]   ;;  %s1226_s2 = inlined_call_operand.vmem [shape: f32[1,128], index: 2, kind: input, shape index: {}]   ;;  %s1227_s3 = inlined_call_operand.vmem [shape: f32[128,128], index: 3, kind: input, shape index: {}]   ;;  %s1228_s4 = inlined_call_operand.vmem [shape: f32[1,128], index: 4, kind: input, shape index: {}]   ;;  %s1229_s5 = inlined_call_operand.vmem [shape: f32[128,256], index: 5, kind: input, shape index: {}]   ;;  %s1230_s6 = inlined_call_operand.vmem [shape: f32[1,256], index: 6, kind: input, shape index: {}]   ;;  %s1231_s7 = inlined_call_operand.vmem [shape: f32[256,64], index: 7, kind: input, shape index: {}]   ;;  %s1232_s8 = inlined_call_operand.vmem [shape: f32[1,64], index: 8, kind: input, shape index: {}]   ;;  %s1233_s9 = inlined_call_operand.hbm [shape: f32[64,128], index: 9, kind: input, shape index: {}]   ;;  %s1234_s10 = inlined_call_operand.vmem [shape: f32[1,128], index: 10, kind: input, shape index: {}]   ;;  %s1235_s11 = inlined_call_operand.hbm [shape: f32[8,128], index: 11, kind: output, shape index: {}]  }
   0x1   :  { %17 = vsyncpa [#allocation4], 0  ;;  %s852_s17 = smov [#allocation2]   ;;  %s804_s21 = scalar_lea.hbm %s1233_s9, 1024 }
   0x2   :  { %s41_s18 = sshll.u32 %s852_s17, 4  ;;  %p805_p0 = scmp.ne.s32.totalorder %s1233_s9, %s804_s21  ;;  %s42_s18 = int_to_ptr.vmem [resolvable:$true] %s41_s18 }
   0x3   :  { %p808_p1 = scmp.lt.u32.totalorder %s804_s21, %s1233_s9 }
   0x5   :  { %p810_p2 = pnand %p808_p1, %p805_p0 }
   0x7   :  { %813 = shalt.err (!%p810_p2)
}
   0x8   :  { %s814_s26 = scalar_lea.vmem %s42_s18, 1024  ;;  %p819_p4 = scmp.lt.s32.totalorder %s42_s18, %s42_s18 }
   0x9   :  { %p815_p3 = scmp.ne.s32.totalorder %s42_s18, %s814_s26  ;;  %p820_p5 = scmp.lt.s32.totalorder %s814_s26, %s814_s26 }
   0xb   :  { %p821_p6 = por %p820_p5, %p819_p4 }
   0xd   :  { %p822_p7 = pnand %p821_p6, %p815_p3 }
   0xf   :  { %825 = shalt.err (!%p822_p7)
}
  0x10   :  { %s853_s27 = smov 128   ;;  %s854_s28 = smov 8  }
  0x11   :  { %47 = dma.hbm_to_vmem [thread:$0]  %s1233_s9, 1024, %s42_s18, [#allocation3], %s853_s27, %s853_s27, %s854_s28  }
  0x12   :  { %848 = dma.done.wait [#allocation3], 1024  }
  0x13   :  { %849 = vsyncadd [#allocation3], 4294966272  ;;  %v855_v0 = vmov 0.0   ;;  %vm856_vm0 = vmmov 0   ;;  %v857_v1 = vmov 0.0|0.0   ;;  %vm66_vm1 = vcmask 1043456  }
  0x14   :  { %638 = vmatprep.subr.mxu0 %v855_v0  ;;  %640 = vmatprep.mubr.msk.f32.mxu0 %vm856_vm0, %v855_v0  ;;  %vm62_vm2 = vcmask 31744   ;;  %v54_v2 = vld [vmem:[%s1225_s1] sm:$0xf]  ;;  %v142_v5 = vld [vmem:[%s1227_s3 + $0x8] sm:$0xff]  ;;  %v143_v6 = vld [vmem:[%s1227_s3 + $0x10] sm:$0xff]  ;;  %vm477_vm3 = vcmask 523264  }
  0x15   :  { %697 = vmatprep.subr.bf16.mxu1 %v857_v1  ;;  %675 = vmatprep.mubr.msk.f32.mxu1 %vm856_vm0, %v855_v0  ;;  %v53_v3 = vld [vmem:[%s1224_s0] sm:$0xff]  ;;  %v144_v7 = vld [vmem:[%s1227_s3 + $0x18] sm:$0xff]  ;;  %v146_v11 = vld [vmem:[%s1227_s3 + $0x28] sm:$0xff]  ;;  %s858_s16 = smov [#allocation5]  }
  0x16   :  { %v141_v4 = vld [vmem:[%s1227_s3] sm:$0xff]  ;;  %639 = vmatpush3.msk.msra.mxu0 %vm66_vm1, %v54_v2  ;;  %v701_v9 = vpack.c.bf16 %v144_v7, %v143_v6  ;;  %v147_v13 = vld [vmem:[%s1227_s3 + $0x30] sm:$0xff]  ;;  %v148_v14 = vld [vmem:[%s1227_s3 + $0x38] sm:$0xff]  ;;  %s559_s17 = sshll.u32 %s858_s16, 4  ;;  %s560_s17 = int_to_ptr.vmem [resolvable:$true] %s559_s17 }
  0x17   :  { %641 = vmatmul.mubr.msk.f32.vlgmr.msra.gmra.mrb[0].mxu0 %vm62_vm2, %v53_v3  ;;  %v698_v8 = vpack.c.bf16 %v142_v5, %v141_v4  ;;  %v145_v10 = vld [vmem:[%s1227_s3 + $0x20] sm:$0xff]  ;;  %v707_v15 = vpack.c.bf16 %v148_v14, %v147_v13  ;;  %v150_v17 = vld [vmem:[%s1227_s3 + $0x48] sm:$0xff]  ;;  %v151_v19 = vld [vmem:[%s1227_s3 + $0x50] sm:$0xff]  ;;  %s826_s18 = scalar_lea.vmem %s560_s17, 128  ;;  %p831_p9 = scmp.lt.s32.totalorder %s560_s17, %s560_s17 }
  0x18   :  { %343 = vmatprep.mubr.f32.mxu0 %v855_v0  ;;  %v704_v12 = vpack.c.bf16 %v146_v11, %v145_v10  ;;  %v149_v16 = vld [vmem:[%s1227_s3 + $0x40] sm:$0xff]  ;;  %v152_v20 = vld [vmem:[%s1227_s3 + $0x58] sm:$0xff]  ;;  %v154_v23 = vld [vmem:[%s1227_s3 + $0x68] sm:$0xff]  ;;  %p827_p8 = scmp.ne.s32.totalorder %s560_s17, %s826_s18  ;;  %p832_p10 = scmp.lt.s32.totalorder %s826_s18, %s826_s18 }
  0x19   :  { %699 = vmatpush3.bf16.msra.mxu1 %v698_v8  ;;  %v710_v18 = vpack.c.bf16 %v150_v17, %v149_v16  ;;  %v713_v21 = vpack.c.bf16 %v152_v20, %v151_v19  ;;  %v153_v22 = vld [vmem:[%s1227_s3 + $0x60] sm:$0xff]  ;;  %v155_v25 = vld [vmem:[%s1227_s3 + $0x70] sm:$0xff]  ;;  %v156_v26 = vld [vmem:[%s1227_s3 + $0x78] sm:$0xff] }
  0x1a   :  { %700 = vmatprep.subr.bf16.mxu1 %v857_v1  ;;  %v716_v24 = vpack.c.bf16 %v154_v23, %v153_v22  ;;  %v719_v27 = vpack.c.bf16 %v156_v26, %v155_v25  ;;  %v236_v28 = vld [vmem:[%s1229_s5 + $0x8] sm:$0xff]  ;;  %v238_v29 = vld [vmem:[%s1229_s5 + $0x18] sm:$0xff]  ;;  %v235_v30 = vld [vmem:[%s1229_s5] sm:$0xff]  ;;  %p833_p11 = por %p832_p10, %p831_p9 }
  0x1b   :  { %v721_v31 = vpack.c.bf16 %v238_v29, %v236_v28  ;;  %v237_v32 = vld [vmem:[%s1229_s5 + $0x10] sm:$0xff]  ;;  %v240_v33 = vld [vmem:[%s1229_s5 + $0x28] sm:$0xff]  ;;  %v242_v34 = vld [vmem:[%s1229_s5 + $0x38] sm:$0xff] }
  0x1c   :  { %v723_v35 = vpack.c.bf16 %v237_v32, %v235_v30  ;;  %v725_v36 = vpack.c.bf16 %v242_v34, %v240_v33  ;;  %v239_v37 = vld [vmem:[%s1229_s5 + $0x20] sm:$0xff]  ;;  %v241_v38 = vld [vmem:[%s1229_s5 + $0x30] sm:$0xff]  ;;  %v244_v39 = vld [vmem:[%s1229_s5 + $0x48] sm:$0xff]  ;;  %p834_p12 = pnand %p833_p11, %p827_p8 }
  0x1d   :  { %702 = vmatpush3.bf16.msra.mxu1 %v701_v9  ;;  %722 = vmatprep.subr.bf16.mxu0 %v721_v31  ;;  %v246_v40 = vld [vmem:[%s1229_s5 + $0x58] sm:$0xff]  ;;  %v727_v41 = vpack.c.bf16 %v241_v38, %v239_v37  ;;  %v243_v43 = vld [vmem:[%s1229_s5 + $0x40] sm:$0xff]  ;;  %v245_v44 = vld [vmem:[%s1229_s5 + $0x50] sm:$0xff] }
  0x1e   :  { %703 = vmatprep.subr.bf16.mxu1 %v857_v1  ;;  %724 = vmatpush1.bf16.msra.mxu0 %v723_v35  ;;  %v729_v42 = vpack.c.bf16 %v246_v40, %v244_v39  ;;  %v248_v45 = vld [vmem:[%s1229_s5 + $0x68] sm:$0xff]  ;;  %v250_v46 = vld [vmem:[%s1229_s5 + $0x78] sm:$0xff]  ;;  %v731_v47 = vpack.c.bf16 %v245_v44, %v243_v43  ;;  %v247_v49 = vld [vmem:[%s1229_s5 + $0x60] sm:$0xff] }
  0x1f   :  { %726 = vmatprep.subr.bf16.mxu0 %v725_v36  ;;  %v733_v48 = vpack.c.bf16 %v250_v46, %v248_v45  ;;  %v249_v50 = vld [vmem:[%s1229_s5 + $0x70] sm:$0xff]  ;;  %v252_v51 = vld [vmem:[%s1229_s5 + $0x88] sm:$0xff]  ;;  %v254_v52 = vld [vmem:[%s1229_s5 + $0x98] sm:$0xff] }
  0x20   :  { %v735_v53 = vpack.c.bf16 %v249_v50, %v247_v49  ;;  %v737_v54 = vpack.c.bf16 %v254_v52, %v252_v51  ;;  %v251_v55 = vld [vmem:[%s1229_s5 + $0x80] sm:$0xff]  ;;  %v253_v56 = vld [vmem:[%s1229_s5 + $0x90] sm:$0xff]  ;;  %v256_v57 = vld [vmem:[%s1229_s5 + $0xa8] sm:$0xff] }
  0x21   :  { %705 = vmatpush3.bf16.msra.mxu1 %v704_v12  ;;  %v258_v58 = vld [vmem:[%s1229_s5 + $0xb8] sm:$0xff]  ;;  %v739_v59 = vpack.c.bf16 %v253_v56, %v251_v55  ;;  %v255_v61 = vld [vmem:[%s1229_s5 + $0xa0] sm:$0xff]  ;;  %v257_v62 = vld [vmem:[%s1229_s5 + $0xb0] sm:$0xff] }
  0x22   :  { %706 = vmatprep.subr.bf16.mxu1 %v857_v1  ;;  %728 = vmatpush1.bf16.msra.mxu0 %v727_v41  ;;  %v741_v60 = vpack.c.bf16 %v258_v58, %v256_v57  ;;  %v260_v63 = vld [vmem:[%s1229_s5 + $0xc8] sm:$0xff]  ;;  %v262_v2 = vld [vmem:[%s1229_s5 + $0xd8] sm:$0xff]  ;;  %v743_v3 = vpack.c.bf16 %v257_v62, %v255_v61  ;;  %v259_v5 = vld [vmem:[%s1229_s5 + $0xc0] sm:$0xff] }
  0x23   :  { %730 = vmatprep.subr.bf16.mxu0 %v729_v42  ;;  %v745_v4 = vpack.c.bf16 %v262_v2, %v260_v63  ;;  %v261_v6 = vld [vmem:[%s1229_s5 + $0xd0] sm:$0xff]  ;;  %v568_v8 = vld [vmem:[%s1226_s2] ss:$0 sm:$0xff]  ;;  %v264_v13 = vld [vmem:[%s1229_s5 + $0xe8] sm:$0xff] }
  0x24   :  { %v747_v7 = vpack.c.bf16 %v261_v6, %v259_v5  ;;  %v266_v14 = vld [vmem:[%s1229_s5 + $0xf8] sm:$0xff]  ;;  %v263_v16 = vld [vmem:[%s1229_s5 + $0xe0] sm:$0xff]  ;;  %v265_v17 = vld [vmem:[%s1229_s5 + $0xf0] sm:$0xff] }
  0x25   :  { %708 = vmatpush3.bf16.msra.mxu1 %v707_v15  ;;  %v749_v15 = vpack.c.bf16 %v266_v14, %v264_v13  ;;  %v368_v19 = vld [vmem:[%s1231_s7 + $0x80] sm:$0xff]  ;;  %v369_v20 = vld [vmem:[%s1231_s7 + $0x88] sm:$0xff]  ;;  %v371_v25 = vld [vmem:[%s1231_s7 + $0x98] sm:$0xff] }
  0x26   :  { %709 = vmatprep.subr.bf16.mxu1 %v857_v1  ;;  %732 = vmatpush1.bf16.msra.mxu0 %v731_v47  ;;  %v753_v22 = vpack.c.bf16 %v369_v20, %v368_v19  ;;  %v353_v23 = vld [vmem:[%s1231_s7 + $0x8] sm:$0xff]  ;;  %v354_v28 = vld [vmem:[%s1231_s7 + $0x10] sm:$0xff]  ;;  %v355_v29 = vld [vmem:[%s1231_s7 + $0x18] sm:$0xff] }
  0x27   :  { %734 = vmatprep.subr.bf16.mxu0 %v733_v48  ;;  %v372_v30 = vld [vmem:[%s1231_s7 + $0xa0] sm:$0xff]  ;;  %v373_v31 = vld [vmem:[%s1231_s7 + $0xa8] sm:$0xff]  ;;  %v759_v32 = vpack.c.bf16 %v355_v29, %v354_v28  ;;  %v374_v36 = vld [vmem:[%s1231_s7 + $0xb0] sm:$0xff] }
  0x28   :  { %v761_v33 = vpack.c.bf16 %v373_v31, %v372_v30  ;;  %v356_v34 = vld [vmem:[%s1231_s7 + $0x20] sm:$0xff]  ;;  %v357_v35 = vld [vmem:[%s1231_s7 + $0x28] sm:$0xff]  ;;  %v375_v37 = vld [vmem:[%s1231_s7 + $0xb8] sm:$0xff] }
  0x29   :  { %711 = vmatpush3.bf16.msra.mxu1 %v710_v18  ;;  %v751_v18 = vpack.c.bf16 %v265_v17, %v263_v16  ;;  %v763_v38 = vpack.c.bf16 %v357_v35, %v356_v34  ;;  %v765_v39 = vpack.c.bf16 %v375_v37, %v374_v36  ;;  %v358_v40 = vld [vmem:[%s1231_s7 + $0x30] sm:$0xff]  ;;  %v359_v41 = vld [vmem:[%s1231_s7 + $0x38] sm:$0xff]  ;;  %v376_v42 = vld [vmem:[%s1231_s7 + $0xc0] sm:$0xff] }
  0x2a   :  { %712 = vmatprep.subr.bf16.mxu1 %v857_v1  ;;  %736 = vmatpush1.bf16.msra.mxu0 %v735_v53  ;;  %v377_v43 = vld [vmem:[%s1231_s7 + $0xc8] sm:$0xff]  ;;  %v767_v44 = vpack.c.bf16 %v359_v41, %v358_v40  ;;  %v360_v46 = vld [vmem:[%s1231_s7 + $0x40] sm:$0xff]  ;;  %v378_v48 = vld [vmem:[%s1231_s7 + $0xd0] sm:$0xff] }
  0x2b   :  { %738 = vmatprep.subr.bf16.mxu0 %v737_v54  ;;  %v769_v45 = vpack.c.bf16 %v377_v43, %v376_v42  ;;  %v361_v47 = vld [vmem:[%s1231_s7 + $0x48] sm:$0xff]  ;;  %v379_v49 = vld [vmem:[%s1231_s7 + $0xd8] sm:$0xff]  ;;  %v362_v52 = vld [vmem:[%s1231_s7 + $0x50] sm:$0xff] }
  0x2c   :  { %v771_v50 = vpack.c.bf16 %v361_v47, %v360_v46  ;;  %v773_v51 = vpack.c.bf16 %v379_v49, %v378_v48  ;;  %v363_v53 = vld [vmem:[%s1231_s7 + $0x58] sm:$0xff]  ;;  %v380_v54 = vld [vmem:[%s1231_s7 + $0xe0] sm:$0xff]  ;;  %v381_v55 = vld [vmem:[%s1231_s7 + $0xe8] sm:$0xff] }
  0x2d   :  { %714 = vmatpush3.bf16.msra.mxu1 %v713_v21  ;;  %v352_v21 = vld [vmem:[%s1231_s7] sm:$0xff]  ;;  %v775_v56 = vpack.c.bf16 %v363_v53, %v362_v52  ;;  %v777_v57 = vpack.c.bf16 %v381_v55, %v380_v54  ;;  %v365_v2 = vld [vmem:[%s1231_s7 + $0x68] sm:$0xff]  ;;  %v383_v5 = vld [vmem:[%s1231_s7 + $0xf8] sm:$0xff] }
  0x2e   :  { %715 = vmatprep.subr.bf16.mxu1 %v857_v1  ;;  %740 = vmatpush1.bf16.msra.mxu0 %v739_v59  ;;  %v755_v26 = vpack.c.bf16 %v353_v23, %v352_v21  ;;  %v571_v58 = vld [vmem:[%s1228_s4] ss:$0 sm:$0xff]  ;;  %v465_v13 = vld [vmem:[#allocation2 + $0x18] sm:$0xff]  ;;  %v467_v29 = vld [vmem:[#allocation2 + $0x28] sm:$0xff] }
  0x2f   :  { %742 = vmatprep.subr.bf16.mxu0 %v741_v60  ;;  %v364_v63 = vld [vmem:[%s1231_s7 + $0x60] sm:$0xff]  ;;  %v468_v31 = vld [vmem:[#allocation2 + $0x30] sm:$0xff] }
  0x30   :  { %v466_v28 = vld [vmem:[#allocation2 + $0x20] sm:$0xff] }
  0x31   :  { %717 = vmatpush3.bf16.msra.mxu1 %v716_v24  ;;  %v370_v24 = vld [vmem:[%s1231_s7 + $0x90] sm:$0xff]  ;;  %v792_v30 = vpack.c.bf16 %v467_v29, %v466_v28  ;;  %v572_v35 = vld [vmem:[%s1232_s8] ss:$0 sm:$0xff] }
  0x32   :  { %718 = vmatprep.subr.bf16.mxu1 %v857_v1  ;;  %744 = vmatpush1.bf16.msra.mxu0 %v743_v3  ;;  %v779_v3 = vpack.c.bf16 %v365_v2, %v364_v63  ;;  %v573_v40 = vld [vmem:[%s1234_s10] ss:$0 sm:$0xff] }
  0x33   :  { %746 = vmatprep.subr.bf16.mxu0 %v745_v4  ;;  %v382_v4 = vld [vmem:[%s1231_s7 + $0xf0] sm:$0xff] }
  0x34   :  { %v781_v6 = vpack.c.bf16 %v383_v5, %v382_v4 }
  0x35   :  { %720 = vmatpush3.bf16.msra.mxu1 %v719_v27  ;;  %v757_v27 = vpack.c.bf16 %v371_v25, %v370_v24 }
  0x36   :  { %748 = vmatpush1.bf16.msra.mxu0 %v747_v7  ;;  %754 = vmatprep.subr.bf16.mxu1 %v753_v22  ;;  %v367_v7 = vld [vmem:[%s1231_s7 + $0x78] sm:$0xff] }
  0x37   :  { %750 = vmatprep.subr.bf16.mxu0 %v749_v15  ;;  %v269_v15 = vlaneseq }
  0x39   :  { %v270_v16 = vshrl.u32 %v269_v15, 7 }
  0x3a   :  { %752 = vmatpush1.bf16.msra.mxu0 %v751_v18  ;;  %v267_v18 = vld [vmem:[%s1230_s6] sm:$0x3] }
  0x3b   :  { %785 = vmatprep.subr.bf16.mxu0 %v857_v1  ;;  %v271_v17 = vsub.s32 0, %v270_v16  ;;  %v275_v19 = vsub.s32 1, %v270_v16 }
  0x3d   :  { %v272_v20 = vrot.slane %v267_v18, %v271_v17  ;;  %v276_v21 = vrot.slane %v267_v18, %v275_v19 }
  0xea   :  { %v136_v9 = vpop.f32.mrb[0].mxu0 }
  0xeb   :  { %v137_v10 = vadd.f32 %v568_v8, %v136_v9  ;;  %v642_v11 = vpop.f32.mrb[1].mxu0  ;;  %v462_v9 = vld [vmem:[#allocation2] sm:$0xff] }
  0xec   :  { %v464_v11 = vld [vmem:[#allocation2 + $0x10] sm:$0xff] }
  0xed   :  { %v140_v12 = vmax.f32 %v137_v10, 0.0  ;;  %v463_v10 = vld [vmem:[#allocation2 + $0x8] sm:$0xff]  ;;  %v789_v14 = vpack.c.bf16 %v465_v13, %v464_v11 }
  0xef   :  { %676 = vmatmul.mubr.f32.vlgmr.msra.gmra.mrb[0].mxu1 %v140_v12  ;;  %v786_v12 = vpack.c.bf16 %v463_v10, %v462_v9 }
  0xf0   :  { %756 = vmatpush3.bf16.msra.mxu1 %v755_v26 }
  0xf1   :  { %758 = vmatprep.subr.bf16.mxu1 %v757_v27 }
  0xf4   :  { %760 = vmatpush3.bf16.msra.mxu1 %v759_v32  ;;  %v469_v32 = vld [vmem:[#allocation2 + $0x38] sm:$0xff] }
  0xf5   :  { %762 = vmatprep.subr.bf16.mxu1 %v761_v33  ;;  %v795_v33 = vpack.c.bf16 %v469_v32, %v468_v31 }
  0xf8   :  { %764 = vmatpush3.bf16.msra.mxu1 %v763_v38 }
  0xf9   :  { %766 = vmatprep.subr.bf16.mxu1 %v765_v39 }
  0xfc   :  { %768 = vmatpush3.bf16.msra.mxu1 %v767_v44 }
  0xfd   :  { %770 = vmatprep.subr.bf16.mxu1 %v769_v45 }
 0x100   :  { %772 = vmatpush3.bf16.msra.mxu1 %v771_v50 }
 0x101   :  { %774 = vmatprep.subr.bf16.mxu1 %v773_v51 }
 0x104   :  { %776 = vmatpush3.bf16.msra.mxu1 %v775_v56 }
 0x105   :  { %778 = vmatprep.subr.bf16.mxu1 %v777_v57 }
 0x108   :  { %780 = vmatpush3.bf16.msra.mxu1 %v779_v3 }
 0x109   :  { %782 = vmatprep.subr.bf16.mxu1 %v781_v6 }
 0x1c2   :  { %v230_v59 = vpop.f32.mrb[0].mxu1 }
 0x1c3   :  { %v231_v60 = vadd.f32 %v571_v58, %v230_v59  ;;  %v677_v61 = vpop.f32.mrb[1].mxu1 }
 0x1c5   :  { %v234_v62 = vmax.f32 %v231_v60, 0.0 }
 0x1c7   :  { %344 = vmatmul.mubr.f32.vlgmr.msra.gmra.mrb[2].mxu0 %v234_v62 }
 0x1c8   :  { %694 = vmatprep.mubr.msk.f32.mxu0 %vm856_vm0, %v855_v0  ;;  %v366_v0 = vld [vmem:[%s1231_s7 + $0x70] sm:$0xff]  ;;  %787 = vmatpush3.bf16.msra.mxu0 %v786_v12 }
 0x1c9   :  { %v783_v8 = vpack.c.bf16 %v367_v7, %v366_v0  ;;  %788 = vmatprep.subr.bf16.mxu0 %v857_v1 }
 0x1cb   :  { %784 = vmatpush3.bf16.msra.mxu1 %v783_v8 }
 0x1cc   :  { %790 = vmatpush3.bf16.msra.mxu0 %v789_v14 }
 0x1cd   :  { %791 = vmatprep.subr.bf16.mxu0 %v857_v1 }
 0x1d0   :  { %793 = vmatpush3.bf16.msra.mxu0 %v792_v30 }
 0x1d1   :  { %794 = vmatprep.subr.bf16.mxu0 %v857_v1 }
 0x1d4   :  { %796 = vmatpush3.bf16.msra.mxu0 %v795_v33 }
 0x29a   :  { %v345_v22 = vpop.f32.mrb[2].mxu0 }
 0x29b   :  { %v346_v23 = vadd.f32 %v345_v22, %v272_v20  ;;  %v347_v24 = vpop.f32.mrb[3].mxu0 }
 0x29c   :  { %v348_v25 = vadd.f32 %v347_v24, %v276_v21 }
 0x29d   :  { %v350_v27 = vmax.f32 %v346_v23, 0.0 }
 0x29e   :  { %v351_v26 = vmax.f32 %v348_v25, 0.0 }
 0x2a0   :  { %455 = vmatprep.mubr.f32.mxu1 %v351_v26 }
 0x2a1   :  { %456 = vmatmul.mubr.f32.vlgmr.msra.gmra.mrb[2].mxu1 %v350_v27 }
 0x374   :  { %v626_v34 = vpop.f32.mrb[2].mxu1 }
 0x375   :  { %v627_v36 = vpop.f32.mrb[3].mxu1 }
 0x376   :  { %v628_v37 = vadd.f32 %v627_v36, %v626_v34 }
 0x378   :  { %v458_v38 = vadd.f32 %v628_v37, %v572_v35 }
 0x37a   :  { %v461_v39 = vmax.f32 %v458_v38, 0.0 }
 0x37c   :  { %695 = vmatmul.mubr.msk.f32.vlgmr.msra.gmra.mrb[4].mxu0 %vm477_vm3, %v461_v39 }
 0x44f   :  { %v547_v1 = vpop.f32.mrb[4].mxu0 }
 0x450   :  { %v548_v41 = vadd.f32 %v573_v40, %v547_v1  ;;  %v696_v42 = vpop.f32.mrb[5].mxu0 }
 0x452   :  { %v551_v43 = vmax.f32 %v548_v41, 0.0 }
 0x454   :  { %552 = vst [vmem:[#allocation5] sm:$0xff] %v551_v43 }
 0x455   :  { %837 = shalt.err (!%p834_p12)
}
 0x456   :  { %s838_s20 = scalar_lea.hbm %s1235_s11, 128 }
 0x457   :  { %p839_p13 = scmp.ne.s32.totalorder %s1235_s11, %s838_s20  ;;  %p842_p0 = scmp.lt.u32.totalorder %s838_s20, %s1235_s11 }
 0x459   :  { %p844_p1 = pnand %p842_p0, %p839_p13 }
 0x45b   :  { %847 = shalt.err (!%p844_p1)
}
 0x45c   :  { %562 = dma.vmem_to_hbm [thread:$0]  %s560_s17, 128, %s1235_s11, [#allocation4]  }
 0x45d   :  { %850 = dma.done.wait [#allocation4], 128  }
 0x45e   :  { %851 = vsyncadd [#allocation4], 4294967168 }
 0x45f   :  { %566 = vsyncpa [#allocation3], 1 }
 0x460   :  { %567 = vsyncpa [#allocation4], 1 }

</bundles_post_ra>
